<compile_context>
chip_gen: v7x
topology: tpu7x:2x2x1
jax: 0.10.0
libtpu: 0.0.40
codegen_flags: <defaults>
</compile_context>

<pallas_src>
import jax
import jax.numpy as jnp
from jax.experimental import pallas as pl
from jax.experimental.pallas import tpu as pltpu

_MIB = 1024 * 1024


def _round_up(x, m):
    return ((x + m - 1) // m) * m


def _tpu_generation_info():
    """(vmem_capacity_bytes, multi_tensorcore, bf16_vpu) with robust fallbacks."""
    vmem_cap = 64 * _MIB                      # conservative default (v7x per-TC VMEM)
    try:
        vmem_cap = int(pltpu.get_tpu_info().vmem_capacity_bytes)
    except Exception:
        pass
    kind = ""
    try:
        kind = jax.devices()[0].device_kind.lower()
    except Exception:
        pass
    multi_tc = any(t in kind for t in ("v7", "v4", "v5p"))   # >1 TensorCore per device
    bf16_vpu = any(t in kind for t in ("v6", "v7"))          # v5e has no bf16 VALU/EUP
    return vmem_cap, multi_tc, bf16_vpu


def _make_kernel(n_valid, matmul_dtype, bf16_epilogue):
    def kernel(obj_ref, att2_ref, wf_ref, wa_ref, out_ref):
        # obj_ref  : (TB, N_pad, D_obj) producer dtype  -- streamed per grid step
        # att2_ref : (TB, A)            f32             -- hoisted decoder proj (+bd+bf)
        # wf_ref   : (D_obj, A)         matmul_dtype    -- features_att weight^T (resident)
        # wa_ref   : (1, A)             f32             -- full_att weight (resident)
        # out_ref  : (TB, D_obj)        f32             -- lane-dense output slab
        tb, n_pad, d_obj = obj_ref.shape
        a = wf_ref.shape[-1]

        obj = obj_ref[...]                                  # native dtype, no f32 copy

        # --- features_att over all TB*N rows as ONE MXU matmul.  The reshape is on
        #     the native-dtype load (N_pad is sublane-aligned so the leading-dim
        #     merge is layout-trivial); only the MXU-operand cast remains.
        obj2d = obj.reshape(tb * n_pad, d_obj)
        if obj2d.dtype != matmul_dtype:
            obj2d = obj2d.astype(matmul_dtype)
        att1 = jnp.dot(obj2d, wf_ref[...],
                       preferred_element_type=jnp.float32).reshape(tb, n_pad, a)

        # --- add hoisted decoder projection (biases folded), ReLU.
        #     dropout(p=0.5) == identity at inference.
        h = jnp.maximum(att1 + att2_ref[...][:, None, :], 0.0)

        # --- full_att score: VPU multiply + cross-lane reduce (no degenerate (A,1)
        #     MXU matmul).  full_att's scalar bias cancels under the softmax.
        att = jnp.sum(h * wa_ref[...][None], axis=-1, keepdims=True)   # (TB, N_pad, 1)

        # --- padded object rows (N_pad > N) -> effectively -inf score -> zero weight.
        if n_pad != n_valid:
            row = jax.lax.broadcasted_iota(jnp.int32, (tb, n_pad, 1), 1)
            att = jnp.where(row < n_valid, att, -1e30)

        # --- stable softmax over objects, kept unnormalized until the end.
        m = jnp.max(att, axis=1, keepdims=True)                        # (TB, 1, 1)
        e = jnp.exp(att - m)                                           # (TB, N_pad, 1)
        s = jnp.sum(e, axis=1, keepdims=True)                          # (TB, 1, 1)

        # --- weighted sum: f32 promotion happens inside the multiply (no persistent
        #     f32 copy of the tile).  On bf16-VPU chips with bf16 features the
        #     multiply runs at bf16 width with f32 accumulation.
        if bf16_epilogue and obj.dtype == jnp.bfloat16:
            weighted = jnp.sum(obj * e.astype(jnp.bfloat16), axis=1, dtype=jnp.float32)
        else:
            weighted = jnp.sum(obj * e, axis=1, dtype=jnp.float32)     # (TB, D_obj)

        inv_s = pl.reciprocal(s[:, 0, :])                              # exact EUP recip
        out_ref[...] = (weighted * inv_s).astype(out_ref.dtype)

    return kernel


def _choose_tb(B, N_pad, D_obj, A, obj_item, mxu_item, cast_in_kernel,
               vmem_budget, multi_tc):
    """Pick the batch tile TB and the grid size.  Targets ~1024 MXU rows per grid
    step, bounded by a VMEM accounting that includes double-buffered streams,
    in-kernel temporaries and the double-buffered resident weight."""
    per_tb = (N_pad * D_obj * (2 * obj_item                         # streamed obj, 2 bufs
                               + (mxu_item if cast_in_kernel else 0)  # MXU-operand cast
                               + 4)                                  # obj*e f32 product
              + N_pad * A * 8                                        # att1 + relu, f32
              + A * 8 + D_obj * 8)                                   # att2 + out, 2 bufs
    fixed = 2 * D_obj * A * mxu_item + 2 * A * 4                     # resident wf (2 bufs) + wa
    avail = max(vmem_budget - fixed, 8 * per_tb)
    tb_cap = max(8, (avail // per_tb) // 8 * 8)

    tb = _round_up(pl.cdiv(1024, N_pad), 8)                          # ~1K MXU rows / step
    tb = max(8, min(tb, tb_cap))

    if B <= tb:
        # Whole batch fits in one block.  Only split on multi-TensorCore parts so
        # both cores get work; on single-TC chips a second step is pure overhead.
        if multi_tc and B >= 16:
            tb = _round_up(pl.cdiv(B, 2), 8)
            return tb, pl.cdiv(B, tb)
        return B, 1
    return tb, pl.cdiv(B, tb)


def object_attention(object_features, decoder_hidden, wf, bf, wd, bd, wa, ba,
                     *, matmul_dtype=jnp.bfloat16, tb_override=None):
    """object_features: (B, N, D_obj), decoder_hidden: (B, D_dec).
    wf: (A, D_obj), wd: (A, D_dec), wa: (1, A), biases 1-D — PyTorch (out, in)
    layout with weight_norm already folded.  Returns (B, D_obj) float32."""
    B, N, D_obj = object_features.shape
    A = wf.shape[0]
    f32 = jnp.float32

    vmem_cap, multi_tc, bf16_vpu = _tpu_generation_info()

    # --- hoist the decoder projection (degenerate M=1 matmul in-kernel) and fold
    #     both linear biases into it; full_att's bias `ba` cancels under softmax.
    att2 = (decoder_hidden.astype(f32) @ wd.T.astype(f32)
            + bd.astype(f32) + bf.astype(f32))                       # (B, A)

    wf_t = wf.T.astype(matmul_dtype)                                 # (D_obj, A) resident
    wa2 = wa.reshape(1, A).astype(f32)                               # (1, A)     resident

    # --- dominant obj stream keeps its producer dtype (no wrapper-side cast pass);
    #     pad N to that dtype's sublane packing so the in-kernel leading-dim merge
    #     is layout-trivial (padded rows are masked to -inf in the score).
    obj = object_features
    obj_item = jnp.dtype(obj.dtype).itemsize
    pack = max(8, 32 // obj_item)
    N_pad = _round_up(N, pack)
    if N_pad != N:
        obj = jnp.pad(obj, ((0, 0), (0, N_pad - N), (0, 0)))

    # --- generation-aware VMEM limit: v7x has 64 MiB/TC -> cap at 48 MiB;
    #     v5e/v6e have 128 MiB -> use ~96 MiB.  Tile budget keeps 20% headroom.
    if vmem_cap <= 64 * _MIB:
        vmem_limit = min(48 * _MIB, (vmem_cap * 3) // 4)
    else:
        vmem_limit = min(112 * _MIB, (vmem_cap * 3) // 4)
    mxu_item = jnp.dtype(matmul_dtype).itemsize
    cast_in_kernel = obj.dtype != matmul_dtype
    TB, num_blocks = _choose_tb(B, N_pad, D_obj, A, obj_item, mxu_item,
                                cast_in_kernel, (vmem_limit * 4) // 5, multi_tc)
    if tb_override is not None:
        TB = tb_override
        num_blocks = pl.cdiv(B, TB)

    # --- no batch padding: ragged tails use Pallas partial-block semantics (every
    #     op is per-batch-row independent, so undefined tail-row reads stay in
    #     tail rows and their writes are masked).
    kernel = _make_kernel(N, matmul_dtype, bf16_vpu)
    grid_spec = pltpu.PrefetchScalarGridSpec(
        num_scalar_prefetch=0,
        grid=(num_blocks,),
        in_specs=[
            pl.BlockSpec((TB, N_pad, D_obj), lambda b: (b, 0, 0)),   # streamed obj tile
            pl.BlockSpec((TB, A),            lambda b: (b, 0)),      # hoisted dec proj
            # TODO(synk): pipeline_mode=pl.Buffered(1) on the two constant operands
            # would halve their VMEM; kept at the default and counted 2x in the budget.
            pl.BlockSpec((D_obj, A),         lambda b: (0, 0)),      # wf^T (resident)
            pl.BlockSpec((1, A),             lambda b: (0, 0)),      # wa   (resident)
        ],
        out_specs=pl.BlockSpec((TB, D_obj), lambda b: (b, 0)),       # lane-dense slab
    )

    return pl.pallas_call(
        kernel,
        out_shape=jax.ShapeDtypeStruct((B, D_obj), jnp.float32),
        grid_spec=grid_spec,
        compiler_params=pltpu.CompilerParams(
            dimension_semantics=("parallel",),     # megacore sharding on 2-TC parts
            vmem_limit_bytes=vmem_limit,
        ),
    )(obj, att2, wf_t, wa2)


# ----------------------------- reference & test -----------------------------

def _weight_norm(v, g):
    # PyTorch weight_norm default dim=0: per output-row normalization.
    norm = jnp.sqrt(jnp.sum(v * v, axis=1, keepdims=True))
    return g[:, None] * v / norm


def _reference(object_features, decoder_hidden, wf, bf, wd, bd, wa, ba):
    att1 = object_features @ wf.T + bf                      # (B, N, A)
    att2 = decoder_hidden @ wd.T + bd                       # (B, A)
    h = jnp.maximum(att1 + att2[:, None, :], 0.0)
    att = (h @ wa.T + ba)[..., 0]                           # (B, N)
    alpha = jax.nn.softmax(att, axis=1)
    return jnp.sum(object_features * alpha[..., None], axis=1)


def _make_case(key, B, N, D_obj, D_dec, A):
    ks = jax.random.split(key, 10)
    object_features = jax.random.normal(ks[0], (B, N, D_obj), jnp.float32)
    decoder_hidden = jax.random.normal(ks[1], (B, D_dec), jnp.float32)
    vf = jax.random.normal(ks[2], (A, D_obj), jnp.float32) * 0.1
    gf = 1.0 + 0.01 * jax.random.normal(ks[3], (A,), jnp.float32)
    bf = 0.01 * jax.random.normal(ks[4], (A,), jnp.float32)
    vd = jax.random.normal(ks[5], (A, D_dec), jnp.float32) * 0.1
    gd = 1.0 + 0.01 * jax.random.normal(ks[6], (A,), jnp.float32)
    bd = 0.01 * jax.random.normal(ks[7], (A,), jnp.float32)
    va = jax.random.normal(ks[8], (1, A), jnp.float32) * 0.1
    ga = jnp.ones((1,), jnp.float32)
    ba = 0.01 * jax.random.normal(ks[9], (1,), jnp.float32)
    return (object_features, decoder_hidden,
            _weight_norm(vf, gf), bf, _weight_norm(vd, gd), bd, _weight_norm(va, ga), ba)


if __name__ == "__main__":
    key = jax.random.PRNGKey(0)
    k1, k2 = jax.random.split(key)

    # Case 1: small shapes from the module docstring scale (single full block).
    args1 = _make_case(k1, B=2, N=8, D_obj=16, D_dec=32, A=32)
    ref1 = _reference(*args1)

    out_bf16 = jax.block_until_ready(object_attention(*args1))          # default bf16 MXU
    assert out_bf16.shape == ref1.shape
    assert jnp.allclose(out_bf16, ref1, atol=5e-2, rtol=5e-2), (out_bf16, ref1)

    out_f32 = jax.block_until_ready(
        object_attention(*args1, matmul_dtype=jnp.float32))              # f32 MXU path
    assert jnp.allclose(out_f32, ref1, atol=1e-2, rtol=1e-2), (out_f32, ref1)

    # Case 2: ragged batch tail (B % TB != 0) and unaligned N (N % 8 != 0),
    # exercising the partial-block and -inf-mask paths.
    args2 = _make_case(k2, B=20, N=12, D_obj=32, D_dec=32, A=32)
    ref2 = _reference(*args2)
    out2 = jax.block_until_ready(object_attention(*args2, tb_override=16))
    assert out2.shape == ref2.shape
    assert jnp.allclose(out2, ref2, atol=5e-2, rtol=5e-2), (out2, ref2)

    print("KERNEL_OK")
</pallas_src>

<mosaic_0001>
module attributes {stable_mosaic.version = 11 : i64} {
  func.func @kernel(%arg0: i32, %arg1: memref<2x8x16xf32, #tpu.memory_space<vmem>>, %arg2: memref<2x32xf32, #tpu.memory_space<vmem>>, %arg3: memref<16x32xbf16, #tpu.memory_space<vmem>>, %arg4: memref<1x32xf32, #tpu.memory_space<vmem>>, %arg5: memref<2x16xf32, #tpu.memory_space<vmem>>) attributes {dimension_semantics = [#tpu.dimension_semantics<parallel>], iteration_bounds = array<i64: 1>, scalar_prefetch = 0 : i64, scratch_operands = 0 : i64, tpu.core_type = #tpu.core_type<tc>, window_params = [{transform_indices = @transform_0, window_bounds = array<i64: 2, 8, 16>}, {transform_indices = @transform_1, window_bounds = array<i64: 2, 32>}, {pipeline_mode = #tpu.pipeline_mode<synchronous>, transform_indices = @transform_2, window_bounds = array<i64: 16, 32>}, {pipeline_mode = #tpu.pipeline_mode<synchronous>, transform_indices = @transform_3, window_bounds = array<i64: 1, 32>}, {transform_indices = @transform_4, window_bounds = array<i64: 2, 16>}]} {
    %c0 = arith.constant 0 : index
    %c0_0 = arith.constant 0 : index
    %c0_1 = arith.constant 0 : index
    %0 = vector.load %arg1[%c0, %c0_0, %c0_1] : memref<2x8x16xf32, #tpu.memory_space<vmem>>, vector<2x8x16xf32>
    %1 = vector.shape_cast %0 : vector<2x8x16xf32> to vector<16x16xf32>
    %2 = arith.truncf %1 : vector<16x16xf32> to vector<16x16xbf16>
    %c0_2 = arith.constant 0 : index
    %c0_3 = arith.constant 0 : index
    %3 = vector.load %arg3[%c0_2, %c0_3] : memref<16x32xbf16, #tpu.memory_space<vmem>>, vector<16x32xbf16>
    %cst = arith.constant dense<0.000000e+00> : vector<16x32xf32>
    %4 = tpu.matmul %2, %3, %cst {dimension_numbers = #tpu.dot_dimension_numbers<[1], [0], [0], [1], [0, 0, 1, 1], [], []>} : vector<16x16xbf16>, vector<16x32xbf16>, vector<16x32xf32> -> vector<16x32xf32>
    %5 = vector.shape_cast %4 : vector<16x32xf32> to vector<2x8x32xf32>
    %c0_4 = arith.constant 0 : index
    %c0_5 = arith.constant 0 : index
    %6 = vector.load %arg2[%c0_4, %c0_5] : memref<2x32xf32, #tpu.memory_space<vmem>>, vector<2x32xf32>
    %7 = vector.shape_cast %6 : vector<2x32xf32> to vector<2x1x32xf32>
    %8 = vector.broadcast %7 : vector<2x1x32xf32> to vector<2x8x32xf32>
    %9 = arith.addf %5, %8 : vector<2x8x32xf32>
    %cst_6 = arith.constant 0.000000e+00 : f32
    %10 = vector.broadcast %cst_6 : f32 to vector<2x8x32xf32>
    %11 = arith.maximumf %9, %10 : vector<2x8x32xf32>
    %c0_7 = arith.constant 0 : index
    %c0_8 = arith.constant 0 : index
    %12 = vector.load %arg4[%c0_7, %c0_8] : memref<1x32xf32, #tpu.memory_space<vmem>>, vector<1x32xf32>
    %13 = vector.shape_cast %12 : vector<1x32xf32> to vector<1x1x32xf32>
    %14 = vector.broadcast %13 : vector<1x1x32xf32> to vector<2x8x32xf32>
    %15 = arith.mulf %11, %14 : vector<2x8x32xf32>
    %cst_9 = arith.constant dense<0.000000e+00> : vector<2x8xf32>
    %16 = vector.multi_reduction <add>, %15, %cst_9 [2] : vector<2x8x32xf32> to vector<2x8xf32>
    %17 = vector.shape_cast %16 : vector<2x8xf32> to vector<2x8x1xf32>
    %cst_10 = arith.constant dense<0xFF800000> : vector<2x1xf32>
    %18 = vector.multi_reduction <maximumf>, %17, %cst_10 [1] : vector<2x8x1xf32> to vector<2x1xf32>
    %19 = vector.shape_cast %18 : vector<2x1xf32> to vector<2x1x1xf32>
    %20 = vector.broadcast %19 : vector<2x1x1xf32> to vector<2x8x1xf32>
    %21 = arith.subf %17, %20 : vector<2x8x1xf32>
    %22 = math.exp %21 : vector<2x8x1xf32>
    %cst_11 = arith.constant dense<0.000000e+00> : vector<2x1xf32>
    %23 = vector.multi_reduction <add>, %22, %cst_11 [1] : vector<2x8x1xf32> to vector<2x1xf32>
    %24 = vector.shape_cast %23 : vector<2x1xf32> to vector<2x1x1xf32>
    %25 = vector.broadcast %22 : vector<2x8x1xf32> to vector<2x8x16xf32>
    %26 = arith.mulf %0, %25 : vector<2x8x16xf32>
    %cst_12 = arith.constant dense<0.000000e+00> : vector<2x16xf32>
    %27 = vector.multi_reduction <add>, %26, %cst_12 [1] : vector<2x8x16xf32> to vector<2x16xf32>
    %28 = vector.shape_cast %24 : vector<2x1x1xf32> to vector<2x1xf32>
    %29 = tpu.reciprocal %28 : vector<2x1xf32> -> vector<2x1xf32>
    %30 = vector.broadcast %29 : vector<2x1xf32> to vector<2x16xf32>
    %31 = arith.mulf %27, %30 : vector<2x16xf32>
    %c0_13 = arith.constant 0 : index
    %c0_14 = arith.constant 0 : index
    %32 = vector.load %arg5[%c0_13, %c0_14] : memref<2x16xf32, #tpu.memory_space<vmem>>, vector<2x16xf32>
    tpu.vector_store %arg5[%c0_13, %c0_14], %31 {strides = array<i32>} : memref<2x16xf32, #tpu.memory_space<vmem>>, vector<2x16xf32>,
    return
  }
  func.func @transform_0(%arg0: i32) -> (i32, i32, i32) {
    %c0_i32 = arith.constant 0 : i32
    %c0_i32_0 = arith.constant 0 : i32
    %c0_i32_1 = arith.constant 0 : i32
    return %arg0, %c0_i32, %c0_i32_0 : i32, i32, i32
  }
  func.func @transform_1(%arg0: i32) -> (i32, i32) {
    %c0_i32 = arith.constant 0 : i32
    %c0_i32_0 = arith.constant 0 : i32
    return %arg0, %c0_i32 : i32, i32
  }
  func.func @transform_2(%arg0: i32) -> (i32, i32) {
    %c0_i32 = arith.constant 0 : i32
    %c0_i32_0 = arith.constant 0 : i32
    %c0_i32_1 = arith.constant 0 : i32
    return %c0_i32, %c0_i32_0 : i32, i32
  }
  func.func @transform_3(%arg0: i32) -> (i32, i32) {
    %c0_i32 = arith.constant 0 : i32
    %c0_i32_0 = arith.constant 0 : i32
    %c0_i32_1 = arith.constant 0 : i32
    return %c0_i32, %c0_i32_0 : i32, i32
  }
  func.func @transform_4(%arg0: i32) -> (i32, i32) {
    %c0_i32 = arith.constant 0 : i32
    %c0_i32_0 = arith.constant 0 : i32
    return %arg0, %c0_i32 : i32, i32
  }
}

</mosaic_0001>

<bundles_post_ra>
// kernel: tpu_custom_call.1
= control target key start
LH: loop header
LB: loop body
LE: loop exit
PB: predicated region body
PF: predicated region fallthrough
CT: control target
= control target key end

     0   :  { %9 = vsyncpa [#allocation3], 0  ;;  %s413_s0 = inlined_call_operand.hbm [shape: f32[2,8,16], index: 0, kind: input, shape index: {}]   ;;  %s414_s1 = inlined_call_operand.vmem [shape: f32[2,32], index: 1, kind: input, shape index: {}]   ;;  %s415_s2 = inlined_call_operand.hbm [shape: bf16[16,32], index: 2, kind: input, shape index: {}]   ;;  %s416_s3 = inlined_call_operand.vmem [shape: f32[1,32], index: 3, kind: input, shape index: {}]   ;;  %s417_s4 = inlined_call_operand.hbm [shape: f32[2,16], index: 4, kind: output, shape index: {}]  }
   0x1   :  { %10 = vsyncpa [#allocation6], 0 }
   0x2   :  { %11 = vsyncpa [#allocation4], 0  ;;  %s333_s15 = smov [#allocation2]   ;;  %s261_s19 = scalar_lea.hbm %s413_s0, 256 }
   0x3   :  { %s17_s16 = sshll.u32 %s333_s15, 4  ;;  %p262_p0 = scmp.ne.s32.totalorder %s413_s0, %s261_s19  ;;  %s18_s16 = int_to_ptr.vmem [resolvable:$true] %s17_s16 }
   0x4   :  { %p265_p1 = scmp.lt.u32.totalorder %s261_s19, %s413_s0 }
   0x6   :  { %p267_p2 = pnand %p265_p1, %p262_p0 }
   0x8   :  { %270 = shalt.err (!%p267_p2)
}
   0x9   :  { %s271_s24 = scalar_lea.vmem %s18_s16, 256  ;;  %p276_p4 = scmp.lt.s32.totalorder %s18_s16, %s18_s16 }
   0xa   :  { %p272_p3 = scmp.ne.s32.totalorder %s18_s16, %s271_s24  ;;  %p277_p5 = scmp.lt.s32.totalorder %s271_s24, %s271_s24 }
   0xc   :  { %p278_p6 = por %p277_p5, %p276_p4 }
   0xe   :  { %p279_p7 = pnand %p278_p6, %p272_p3 }
  0x10   :  { %282 = shalt.err (!%p279_p7)
}
  0x11   :  { %s334_s25 = smov 128   ;;  %s335_s26 = smov 8  }
  0x12   :  { %23 = dma.hbm_to_vmem [thread:$0]  %s413_s0, 256, %s18_s16, [#allocation3], %s334_s25, %s334_s25, %s335_s26  }
  0x13   :  { %s336_s29 = smov [#allocation5]   ;;  %s283_s7 = scalar_lea.hbm %s415_s2, 128 }
  0x14   :  { %s31_s30 = sshll.u32 %s336_s29, 4  ;;  %p284_p8 = scmp.ne.s32.totalorder %s415_s2, %s283_s7  ;;  %s32_s30 = int_to_ptr.vmem [resolvable:$true] %s31_s30 }
  0x15   :  { %p287_p9 = scmp.lt.u32.totalorder %s283_s7, %s415_s2 }
  0x17   :  { %p289_p10 = pnand %p287_p9, %p284_p8 }
  0x19   :  { %292 = shalt.err (!%p289_p10)
}
  0x1a   :  { %s293_s12 = scalar_lea.vmem %s32_s30, 128  ;;  %p298_p12 = scmp.lt.s32.totalorder %s32_s30, %s32_s30 }
  0x1b   :  { %p294_p11 = scmp.ne.s32.totalorder %s32_s30, %s293_s12  ;;  %p299_p13 = scmp.lt.s32.totalorder %s293_s12, %s293_s12 }
  0x1d   :  { %p300_p0 = por %p299_p13, %p298_p12 }
  0x1f   :  { %p301_p1 = pnand %p300_p0, %p294_p11 }
  0x21   :  { %304 = shalt.err (!%p301_p1)
}
  0x22   :  { %s337_s0 = smov 64   ;;  %s338_s13 = smov 4  }
  0x23   :  { %37 = dma.hbm_to_vmem [thread:$0]  %s415_s2, 128, %s32_s30, [#allocation6], %s337_s0, %s337_s0, %s338_s13  }
  0x24   :  { %327 = dma.done.wait [#allocation3], 256  }
  0x25   :  { %328 = vsyncadd [#allocation3], 4294967040 }
  0x26   :  { %329 = dma.done.wait [#allocation6], 128  }
  0x27   :  { %330 = vsyncadd [#allocation6], 4294967168  ;;  %v339_v0 = vmov 0.0   ;;  %vm340_vm0 = vmmov 0   ;;  %v252_v1 = vld [vmem:[#allocation5] sm:$0xff]   ;;  %v47_v2 = vld [vmem:[#allocation2] sm:$0xff]  ;;  %v116_v7 = vlaneseq }
  0x28   :  { %236 = vmatprep.subr.bf16.mxu0 %v339_v0  ;;  %238 = vmatprep.mubr.msk.bf16.mxu0 %vm340_vm0, %v339_v0  ;;  %v48_v3 = vld [vmem:[#allocation2 + $0x8] sm:$0xff]  ;;  %vm58_vm1 = vcmask 130048   ;;  %v341_v5 = vmov 1966171168   ;;  %v233_v22 = vld [vmem:[%s416_s3] ss:$0 sm:$0xff] }
  0x29   :  { %237 = vmatpush3.bf16.msra.mxu0 %v252_v1  ;;  %v49_v4 = vpack.c.bf16 %v48_v3, %v47_v2  ;;  %v114_v6 = vunpack.c.l.s4 %v341_v5  ;;  %v117_v9 = vshrl.u32 %v116_v7, 7  ;;  %v232_v10 = vld.sshfl [vmem:[%s414_s1] sm:$0x11 pattern:$0x75316420]  ;;  %vm150_vm2 = vcmask 261120  }
  0x2a   :  { %v112_v12 = vcombine.high %v232_v10, %v232_v10  ;;  %s342_s1 = smov [#allocation7]   ;;  %vm209_vm3 = vcmask 1041409   ;;  %vm212_vm4 = vcmask 123904  }
  0x2b   :  { %v115_v8 = vunpack.c.0.s8 %v114_v6  ;;  %v129_v14 = vsub.s32 0, %v117_v9  ;;  %s220_s3 = sshll.u32 %s342_s1, 4  ;;  %s221_s3 = int_to_ptr.vmem [resolvable:$true] %s220_s3 }
  0x2c   :  { %239 = vmatmul.mubr.msk.bf16.vlgmr.msra.gmra.mrb[0].mxu0 %vm58_vm1, %v49_v4  ;;  %s305_s19 = scalar_lea.vmem %s221_s3, 32  ;;  %p310_p3 = scmp.lt.s32.totalorder %s221_s3, %s221_s3 }
  0x2d   :  { %v118_v11 = vsub.s32 %v115_v8, %v117_v9  ;;  %p306_p2 = scmp.ne.s32.totalorder %s221_s3, %s305_s19  ;;  %p311_p4 = scmp.lt.s32.totalorder %s305_s19, %s305_s19 }
  0x2f   :  { %v119_v13 = vrot.slane %v232_v10, %v118_v11  ;;  %v126_v15 = vrot.slane %v112_v12, %v118_v11  ;;  %p312_p5 = por %p311_p4, %p310_p3 }
  0x31   :  { %v130_v16 = vrot.slane %v119_v13, %v129_v14  ;;  %v134_v17 = vrot.slane %v126_v15, %v129_v14  ;;  %p313_p6 = pnand %p312_p5, %p306_p2 }
  0xff   :  { %v96_v18 = vpop.f32.mrb[0].mxu0 }
 0x100   :  { %v137_v19 = vadd.f32 %v130_v16, %v96_v18  ;;  %v240_v20 = vpop.f32.mrb[1].mxu0 }
 0x101   :  { %v99_v21 = vpop.f32.mrb[2].mxu0 }
 0x102   :  { %v139_v23 = vmax.f32 %v137_v19, 0.0  ;;  %v138_v24 = vadd.f32 %v134_v17, %v99_v21  ;;  %v241_v25 = vpop.f32.mrb[3].mxu0 }
 0x104   :  { %v140_v26 = vmax.f32 %v138_v24, 0.0  ;;  %v148_v27 = vmul.f32 %v233_v22, %v139_v23 }
 0x106   :  { %v151_v28 = vsel %vm150_vm2, %v148_v27, 0.0  ;;  %v149_v29 = vmul.f32 %v233_v22, %v140_v26 }
 0x107   :  { %152 = vadd.xlane.f32.xlu0 %v151_v28 }
 0x108   :  { %v154_v30 = vsel %vm150_vm2, %v149_v29, 0.0 }
 0x10b   :  { %155 = vadd.xlane.f32.xlu0 %v154_v30 }
 0x194   :  { %v153_v31 = vpop.xlane.xlu0 %152 }
 0x195   :  { %v157_v32 = vrot.slane %v153_v31, 4 }
 0x197   :  { %v158_v33 = vmax.f32 %v153_v31, %v157_v32 }
 0x198   :  { %v156_v34 = vpop.xlane.xlu0 %155 }
 0x199   :  { %v159_v35 = vrot.slane %v158_v33, 2  ;;  %v163_v36 = vrot.slane %v156_v34, 4 }
 0x19b   :  { %v160_v37 = vmax.f32 %v158_v33, %v159_v35  ;;  %v164_v38 = vmax.f32 %v156_v34, %v163_v36 }
 0x19d   :  { %v161_v39 = vrot.slane %v160_v37, 1  ;;  %v165_v40 = vrot.slane %v164_v38, 2 }
 0x19f   :  { %v162_v41 = vmax.f32 %v160_v37, %v161_v39  ;;  %v166_v42 = vmax.f32 %v164_v38, %v165_v40 }
 0x1a1   :  { %v169_v43 = vsub.f32 %v153_v31, %v162_v41  ;;  %v167_v44 = vrot.slane %v166_v42, 1 }
 0x1a3   :  { %v171_v45 = vmul.f32 1.442695, %v169_v43  ;;  %v168_v46 = vmax.f32 %v166_v42, %v167_v44 }
 0x1a5   :  { %253 = vpow2.f32 %v171_v45  ;;  %v170_v47 = vsub.f32 %v156_v34, %v168_v46 }
 0x1a7   :  { %v173_v48 = vmul.f32 1.442695, %v170_v47 }
 0x1a9   :  { %255 = vpow2.f32 %v173_v48 }
 0x1af   :  { %v254_v49 = vpop.eup %253 }
 0x1b0   :  { %v175_v50 = vrot.slane %v254_v49, 4  ;;  %v187_v51 = vmul.f32 %v254_v49, %v47_v2 }
 0x1b2   :  { %v176_v52 = vadd.f32 %v254_v49, %v175_v50  ;;  %v189_v53 = vsel %vm58_vm1, %v187_v51, 0.0 }
 0x1b3   :  { %v256_v54 = vpop.eup %255  ;;  %v190_v58 = vrot.slane %v189_v53, 4 }
 0x1b4   :  { %v177_v55 = vrot.slane %v176_v52, 2  ;;  %v181_v56 = vrot.slane %v256_v54, 4  ;;  %v188_v57 = vmul.f32 %v256_v54, %v48_v3 }
 0x1b5   :  { %v191_v1 = vadd.f32 %v190_v58, %v189_v53 }
 0x1b6   :  { %v178_v59 = vadd.f32 %v177_v55, %v176_v52  ;;  %v182_v60 = vadd.f32 %v256_v54, %v181_v56  ;;  %v196_v61 = vsel %vm58_vm1, %v188_v57, 0.0 }
 0x1b7   :  { %v197_v62 = vrot.slane %v196_v61, 4  ;;  %v192_v7 = vrot.slane %v191_v1, 2 }
 0x1b8   :  { %v179_v63 = vrot.slane %v178_v59, 1  ;;  %v183_v0 = vrot.slane %v182_v60, 2 }
 0x1b9   :  { %v198_v4 = vadd.f32 %v197_v62, %v196_v61  ;;  %v193_v10 = vadd.f32 %v192_v7, %v191_v1 }
 0x1ba   :  { %v180_v5 = vadd.f32 %v179_v63, %v178_v59  ;;  %v184_v6 = vadd.f32 %v183_v0, %v182_v60 }
 0x1bb   :  { %v199_v8 = vrot.slane %v198_v4, 2  ;;  %v194_v11 = vrot.slane %v193_v10, 1 }
 0x1bc   :  { %v185_v2 = vrot.slane %v184_v6, 1  ;;  %257 = vrcp.f32 %v180_v5 }
 0x1bd   :  { %v200_v3 = vadd.f32 %v199_v8, %v198_v4  ;;  %v195_v14 = vadd.f32 %v194_v11, %v193_v10 }
 0x1be   :  { %v186_v9 = vadd.f32 %v185_v2, %v184_v6 }
 0x1bf   :  { %v201_v12 = vrot.slane %v200_v3, 1 }
 0x1c0   :  { %259 = vrcp.f32 %v186_v9 }
 0x1c1   :  { %v202_v15 = vadd.f32 %v201_v12, %v200_v3 }
 0x1c6   :  { %v258_v13 = vpop.eup %257 }
 0x1c7   :  { %v205_v17 = vmul.f32 %v258_v13, %v195_v14 }
 0x1ca   :  { %v260_v16 = vpop.eup %259 }
 0x1cb   :  { %v206_v18 = vmul.f32 %v260_v16, %v202_v15 }
 0x1cd   :  { %v210_v19 = vsel %vm209_vm3, %v206_v18, %v205_v17 }
 0x1ce   :  { %213 = vst.msk [vmem:[#allocation7] sm:$0x3] %vm212_vm4, %v210_v19 }
 0x1cf   :  { %316 = shalt.err (!%p313_p6)
}
 0x1d0   :  { %s317_s22 = scalar_lea.hbm %s417_s4, 32 }
 0x1d1   :  { %p318_p7 = scmp.ne.s32.totalorder %s417_s4, %s317_s22  ;;  %p321_p8 = scmp.lt.u32.totalorder %s317_s22, %s417_s4 }
 0x1d3   :  { %p323_p9 = pnand %p321_p8, %p318_p7 }
 0x1d5   :  { %326 = shalt.err (!%p323_p9)
}
 0x1d6   :  { %223 = dma.vmem_to_hbm [thread:$0]  %s221_s3, 32, %s417_s4, [#allocation4]  }
 0x1d7   :  { %331 = dma.done.wait [#allocation4], 32  }
 0x1d8   :  { %332 = vsyncadd [#allocation4], 4294967264 }
 0x1d9   :  { %227 = vsyncpa [#allocation3], 1 }
 0x1da   :  { %228 = vsyncpa [#allocation6], 1 }
 0x1db   :  { %229 = vsyncpa [#allocation4], 1 }

</bundles_post_ra>
